<compile_context>
chip_gen: v7x
topology: tpu7x:2x2x1
jax: 0.10.0
libtpu: 0.0.40
codegen_flags: <defaults>
</compile_context>

<pallas_src>
import numpy as np
import jax
import jax.numpy as jnp
from jax import lax
from jax.experimental import pallas as pl
from jax.experimental.pallas import tpu as pltpu  # noqa: F401  (TPU-specific tuning hooks)


# ---------------- fused Pallas kernel ----------------

def fused_char_model_kernel(bv_ref, len_ref, idx_ref, embproj_ref, pk_ref, out_ref):
    """Fused SingleCharModel forward (eval mode).

    bv_ref      : (T*V, 1)   int32  batch_vocab, time-major flattened (row t*V + v)
    len_ref     : (V, 1)     int32  voc_lengths
    idx_ref     : (B*S, 1)   int32  index_mapping, flattened
    embproj_ref : (CVP, 4H)  f32    char_embedding @ W_ih^T + b, zero-padded to CVP=128 rows
    pk_ref      : (2H+1, 4H) f32    packed [W_hh^T ; W_t^T lane-padded ; b_t lane-padded]
    out_ref     : (B*S, 4H)  f32    lane-dense padded output (wrapper slices [:, :WEMB])
    """
    TV = bv_ref.shape[0]
    CVP = embproj_ref.shape[0]
    V = len_ref.shape[0]
    T = TV // V
    BS = idx_ref.shape[0]
    G = embproj_ref.shape[1]          # 4H (== padded output lane width)
    H = G // 4
    f32 = jnp.float32

    # --- fused char-gather + input projection + bias: ONE lane-dense MXU matmul ---
    char_iota = lax.broadcasted_iota(jnp.int32, (TV, CVP), 1)
    onehot_chars = (char_iota == bv_ref[...]).astype(f32)                 # (T*V, 128)
    gates_x = jnp.dot(onehot_chars, embproj_ref[...],
                      preferred_element_type=f32)                         # (T*V, 4H)

    # --- packed small params (single DMA) ---
    pk = pk_ref[...]
    whh = pk[0:H, :]                                                      # (H, 4H)
    wt = pk[H:2 * H, :]                                                   # (H, 4H) lane-padded W_t^T
    bt = pk[2 * H:2 * H + 1, :]                                           # (1, 4H) lane-padded b_t

    lengths = len_ref[...]                                                # (V, 1)

    # Loop-invariant lane affine for the single-tanh gate trick (hoisted: JAX does
    # not CSE broadcasts inside loops).  sigmoid(x) = 0.5*tanh(0.5*x) + 0.5 on the
    # i/f/o lanes; plain tanh(x) on the g lanes.  Pre- and post-scale are identical.
    lane = lax.broadcasted_iota(jnp.int32, (V, G), 1)
    is_g = (lane >= 2 * H) & (lane < 3 * H)
    scale = jnp.where(is_g, 1.0, 0.5).astype(f32)                         # (V, 4H)
    shift = jnp.where(is_g, 0.0, 0.5).astype(f32)                         # (V, 4H)

    h = jnp.zeros((V, H), f32)
    c = jnp.zeros((V, H), f32)
    last = jnp.zeros((V, H), f32)

    # T is small and static: fully unrolled recurrence, static sublane-aligned slices,
    # full scheduler visibility, state kept in vregs.
    for t in range(T):
        gx_t = gates_x[t * V:(t + 1) * V, :]                              # (V, 4H) static slice
        gates = gx_t + jnp.dot(h, whh, preferred_element_type=f32)        # (V, 4H)

        # Single full-width tanh per step on the serial path (EUP has one slot).
        act = scale * jnp.tanh(scale * gates) + shift                     # [σi|σf|tanh g|σo]
        i_g = act[:, 0 * H:1 * H]
        f_g = act[:, 1 * H:2 * H]
        g_g = act[:, 2 * H:3 * H]
        o_g = act[:, 3 * H:4 * H]

        c = f_g * c + i_g * g_g
        h = o_g * jnp.tanh(c)

        # Capture h at t == voc_lengths - 1  (== output[arange(V), voc_lengths-1])
        last = jnp.where(lengths == (t + 1), h, last)

    # --- tail reordered: char_transform on the V rows first, then the gather ---
    proj_last = jnp.dot(last, wt, preferred_element_type=f32) + bt        # (V, 4H)
    word_iota = lax.broadcasted_iota(jnp.int32, (BS, V), 1)
    onehot_words = (word_iota == idx_ref[...]).astype(f32)                # (B*S, V)
    # Lane-dense, unmasked store (bias fold through the one-hot is exact: rows sum to 1).
    out_ref[...] = jnp.dot(onehot_words, proj_last, preferred_element_type=f32)


# ---------------- wrapper ----------------

def single_char_model_forward(params, batch_vocab, voc_lengths, index_mapping):
    """Eval-mode forward of SingleCharModel via one fused pallas_call."""
    V, T = batch_vocab.shape
    B, S = index_mapping.shape
    CV = params["char_embedding"].shape[0]
    H = params["w_hh_T"].shape[0]
    WEMB = params["w_t_T"].shape[1]
    G = 4 * H                                   # lane-dense working/output width
    CVP = ((max(CV, 128) + 127) // 128) * 128   # pad gather contraction to 128 lanes

    assert G % 128 == 0, "4*H must be a multiple of 128 for lane-dense packing"
    assert WEMB <= G

    # Pre-fused table: row c = char_embedding[c] @ W_ih^T + (b_ih + b_hh); zero-pad rows.
    emb_proj = (params["char_embedding"].astype(jnp.float32) @ params["w_ih_T"]
                + params["b_lstm"])
    emb_proj = jnp.pad(emb_proj, ((0, CVP - CV), (0, 0))).astype(jnp.float32)   # (CVP, 4H)

    # Packed small params (single DMA): [W_hh^T ; W_t^T lane-padded ; b_t lane-padded]
    wt_pad = jnp.pad(params["w_t_T"], ((0, 0), (0, G - WEMB)))
    bt_pad = jnp.pad(params["b_t"].reshape(1, WEMB), ((0, 0), (0, G - WEMB)))
    packed = jnp.concatenate([params["w_hh_T"], wt_pad, bt_pad],
                             axis=0).astype(jnp.float32)                        # (2H+1, 4H)

    # Time-major flatten so step t is a contiguous (V, :) row block in-kernel.
    bv_tmajor = batch_vocab.T.reshape(T * V, 1).astype(jnp.int32)
    lens2d = voc_lengths.reshape(V, 1).astype(jnp.int32)
    idx2d = index_mapping.reshape(B * S, 1).astype(jnp.int32)

    out_pad = pl.pallas_call(
        fused_char_model_kernel,
        out_shape=jax.ShapeDtypeStruct((B * S, G), jnp.float32),
    )(bv_tmajor, lens2d, idx2d, emb_proj, packed)

    return out_pad[:, :WEMB].reshape(B, S, WEMB)


# ---------------- pure-JAX reference ----------------

def reference_forward(params, batch_vocab, voc_lengths, index_mapping):
    x = params["char_embedding"][batch_vocab].astype(jnp.float32)
    V, T, E = x.shape
    H = params["w_hh_T"].shape[0]

    def step(carry, x_t):
        h, c = carry
        gates = x_t @ params["w_ih_T"] + h @ params["w_hh_T"] + params["b_lstm"][0]
        i = jax.nn.sigmoid(gates[:, :H])
        f = jax.nn.sigmoid(gates[:, H:2 * H])
        g = jnp.tanh(gates[:, 2 * H:3 * H])
        o = jax.nn.sigmoid(gates[:, 3 * H:])
        c = f * c + i * g
        h = o * jnp.tanh(c)
        return (h, c), h

    init = (jnp.zeros((V, H), jnp.float32), jnp.zeros((V, H), jnp.float32))
    _, hs = lax.scan(step, init, jnp.swapaxes(x, 0, 1))
    hs = jnp.swapaxes(hs, 0, 1)                                    # (V, T, H)
    last = hs[jnp.arange(V), voc_lengths - 1]                      # (V, H)
    we = last[index_mapping]                                       # (B, S, H)
    return we @ params["w_t_T"] + params["b_t"]                    # (B, S, W)


# ---------------- main ----------------

if __name__ == "__main__":
    # Small shapes consistent with the module
    CHAR_VOCAB = 60    # len(char_vocab)
    E = 16             # char_emb_size
    H = 32             # hidden_size
    WEMB = 32          # word_emb_size
    V = 16             # chars.vocab_size (unique words in batch)
    T = 6              # max chars per word
    B, S = 2, 8        # batch, sentence length (index_mapping shape)

    key = jax.random.PRNGKey(0)
    ks = jax.random.split(key, 10)
    kH = 1.0 / np.sqrt(H)

    params = {
        # nn.Embedding(len(char_vocab), char_emb_size): N(0, 1)
        "char_embedding": jax.random.normal(ks[0], (CHAR_VOCAB, E), jnp.float32),
        # EnhancedLSTM(char_emb_size, hidden_size): uniform(-1/sqrt(H), 1/sqrt(H)), pre-transposed
        "w_ih_T": jax.random.uniform(ks[1], (E, 4 * H), jnp.float32, -kH, kH),
        "w_hh_T": jax.random.uniform(ks[2], (H, 4 * H), jnp.float32, -kH, kH),
        "b_lstm": (jax.random.uniform(ks[3], (1, 4 * H), jnp.float32, -kH, kH)
                   + jax.random.uniform(ks[4], (1, 4 * H), jnp.float32, -kH, kH)),
        # nn.Linear(hidden_size, word_emb_size), pre-transposed
        "w_t_T": jax.random.uniform(ks[5], (H, WEMB), jnp.float32, -kH, kH),
        "b_t": jax.random.uniform(ks[6], (WEMB,), jnp.float32, -kH, kH),
    }

    # "chars" batch object (synthetic, deterministic)
    batch_vocab = jax.random.randint(ks[7], (V, T), 0, CHAR_VOCAB, jnp.int32)
    voc_lengths = jax.random.randint(ks[8], (V,), 1, T + 1, jnp.int32)
    index_mapping = jax.random.randint(ks[9], (B, S), 0, V, jnp.int32)

    out = single_char_model_forward(params, batch_vocab, voc_lengths, index_mapping)
    out = jax.block_until_ready(out)

    ref = reference_forward(params, batch_vocab, voc_lengths, index_mapping)
    np.testing.assert_allclose(np.asarray(out), np.asarray(ref), rtol=1e-4, atol=1e-4)

    assert out.shape == (B, S, WEMB) and out.dtype == jnp.float32
    print("KERNEL_OK")
</pallas_src>

<mosaic_0001>
module attributes {stable_mosaic.version = 11 : i64} {
  func.func @fused_char_model_kernel(%arg0: memref<96x1xi32, #tpu.memory_space<vmem>>, %arg1: memref<16x1xi32, #tpu.memory_space<vmem>>, %arg2: memref<16x1xi32, #tpu.memory_space<vmem>>, %arg3: memref<128x128xf32, #tpu.memory_space<vmem>>, %arg4: memref<65x128xf32, #tpu.memory_space<vmem>>, %arg5: memref<16x128xf32, #tpu.memory_space<vmem>>) attributes {dimension_semantics = [], scalar_prefetch = 0 : i64, scratch_operands = 0 : i64, tpu.core_type = #tpu.core_type<tc>} {
    %0 = tpu.iota {dimensions = array<i32: 1>} : vector<96x128xi32>
    %c0 = arith.constant 0 : index
    %c0_0 = arith.constant 0 : index
    %1 = vector.load %arg0[%c0, %c0_0] : memref<96x1xi32, #tpu.memory_space<vmem>>, vector<96x1xi32>
    %2 = vector.broadcast %1 : vector<96x1xi32> to vector<96x128xi32>
    %3 = arith.cmpi eq, %0, %2 : vector<96x128xi32>
    %4 = arith.extui %3 : vector<96x128xi1> to vector<96x128xi32>
    %5 = arith.sitofp %4 : vector<96x128xi32> to vector<96x128xf32>
    %c0_1 = arith.constant 0 : index
    %c0_2 = arith.constant 0 : index
    %6 = vector.load %arg3[%c0_1, %c0_2] : memref<128x128xf32, #tpu.memory_space<vmem>>, vector<128x128xf32>
    %cst = arith.constant dense<0.000000e+00> : vector<96x128xf32>
    %7 = tpu.matmul %5, %6, %cst {dimension_numbers = #tpu.dot_dimension_numbers<[1], [0], [0], [1], [0, 0, 1, 1], [], []>} : vector<96x128xf32>, vector<128x128xf32>, vector<96x128xf32> -> vector<96x128xf32>
    %c0_3 = arith.constant 0 : index
    %c0_4 = arith.constant 0 : index
    %8 = vector.load %arg4[%c0_3, %c0_4] : memref<65x128xf32, #tpu.memory_space<vmem>>, vector<65x128xf32>
    %9 = vector.extract_strided_slice %8 {offsets = [0, 0], sizes = [32, 128], strides = [1, 1]} : vector<65x128xf32> to vector<32x128xf32>
    %10 = vector.extract_strided_slice %8 {offsets = [32, 0], sizes = [32, 128], strides = [1, 1]} : vector<65x128xf32> to vector<32x128xf32>
    %11 = vector.extract_strided_slice %8 {offsets = [64, 0], sizes = [1, 128], strides = [1, 1]} : vector<65x128xf32> to vector<1x128xf32>
    %c0_5 = arith.constant 0 : index
    %c0_6 = arith.constant 0 : index
    %12 = vector.load %arg1[%c0_5, %c0_6] : memref<16x1xi32, #tpu.memory_space<vmem>>, vector<16x1xi32>
    %13 = tpu.iota {dimensions = array<i32: 1>} : vector<16x128xi32>
    %c64_i32 = arith.constant 64 : i32
    %14 = vector.broadcast %c64_i32 : i32 to vector<16x128xi32>
    %15 = arith.cmpi sge, %13, %14 : vector<16x128xi32>
    %c96_i32 = arith.constant 96 : i32
    %16 = vector.broadcast %c96_i32 : i32 to vector<16x128xi32>
    %17 = arith.cmpi slt, %13, %16 : vector<16x128xi32>
    %18 = arith.andi %15, %17 : vector<16x128xi1>
    %cst_7 = arith.constant 1.000000e+00 : f32
    %cst_8 = arith.constant 5.000000e-01 : f32
    %19 = vector.broadcast %cst_7 : f32 to vector<16x128xf32>
    %20 = vector.broadcast %cst_8 : f32 to vector<16x128xf32>
    %21 = arith.select %18, %19, %20 : vector<16x128xi1>, vector<16x128xf32>
    %cst_9 = arith.constant 0.000000e+00 : f32
    %cst_10 = arith.constant 5.000000e-01 : f32
    %22 = vector.broadcast %cst_9 : f32 to vector<16x128xf32>
    %23 = vector.broadcast %cst_10 : f32 to vector<16x128xf32>
    %24 = arith.select %18, %22, %23 : vector<16x128xi1>, vector<16x128xf32>
    %cst_11 = arith.constant 0.000000e+00 : f32
    %25 = vector.broadcast %cst_11 : f32 to vector<16x32xf32>
    %cst_12 = arith.constant 0.000000e+00 : f32
    %26 = vector.broadcast %cst_12 : f32 to vector<16x32xf32>
    %cst_13 = arith.constant 0.000000e+00 : f32
    %27 = vector.broadcast %cst_13 : f32 to vector<16x32xf32>
    %28 = vector.extract_strided_slice %7 {offsets = [0, 0], sizes = [16, 128], strides = [1, 1]} : vector<96x128xf32> to vector<16x128xf32>
    %cst_14 = arith.constant dense<0.000000e+00> : vector<16x128xf32>
    %29 = tpu.matmul %25, %9, %cst_14 {dimension_numbers = #tpu.dot_dimension_numbers<[1], [0], [0], [1], [0, 0, 1, 1], [], []>} : vector<16x32xf32>, vector<32x128xf32>, vector<16x128xf32> -> vector<16x128xf32>
    %30 = arith.addf %28, %29 : vector<16x128xf32>
    %31 = arith.mulf %21, %30 : vector<16x128xf32>
    %32 = math.tanh %31 : vector<16x128xf32>
    %33 = arith.mulf %21, %32 : vector<16x128xf32>
    %34 = arith.addf %33, %24 : vector<16x128xf32>
    %35 = vector.extract_strided_slice %34 {offsets = [0, 0], sizes = [16, 32], strides = [1, 1]} : vector<16x128xf32> to vector<16x32xf32>
    %36 = vector.extract_strided_slice %34 {offsets = [0, 32], sizes = [16, 32], strides = [1, 1]} : vector<16x128xf32> to vector<16x32xf32>
    %37 = vector.extract_strided_slice %34 {offsets = [0, 64], sizes = [16, 32], strides = [1, 1]} : vector<16x128xf32> to vector<16x32xf32>
    %38 = vector.extract_strided_slice %34 {offsets = [0, 96], sizes = [16, 32], strides = [1, 1]} : vector<16x128xf32> to vector<16x32xf32>
    %39 = arith.mulf %36, %26 : vector<16x32xf32>
    %40 = arith.mulf %35, %37 : vector<16x32xf32>
    %41 = arith.addf %39, %40 : vector<16x32xf32>
    %42 = math.tanh %41 : vector<16x32xf32>
    %43 = arith.mulf %38, %42 : vector<16x32xf32>
    %c1_i32 = arith.constant 1 : i32
    %44 = vector.broadcast %c1_i32 : i32 to vector<16x1xi32>
    %45 = arith.cmpi eq, %12, %44 : vector<16x1xi32>
    %46 = vector.shape_cast %45 : vector<16x1xi1> to vector<16x1xi1>
    %47 = vector.broadcast %46 : vector<16x1xi1> to vector<16x32xi1>
    %48 = arith.select %47, %43, %27 : vector<16x32xi1>, vector<16x32xf32>
    %49 = vector.extract_strided_slice %7 {offsets = [16, 0], sizes = [16, 128], strides = [1, 1]} : vector<96x128xf32> to vector<16x128xf32>
    %cst_15 = arith.constant dense<0.000000e+00> : vector<16x128xf32>
    %50 = tpu.matmul %43, %9, %cst_15 {dimension_numbers = #tpu.dot_dimension_numbers<[1], [0], [0], [1], [0, 0, 1, 1], [], []>} : vector<16x32xf32>, vector<32x128xf32>, vector<16x128xf32> -> vector<16x128xf32>
    %51 = arith.addf %49, %50 : vector<16x128xf32>
    %52 = arith.mulf %21, %51 : vector<16x128xf32>
    %53 = math.tanh %52 : vector<16x128xf32>
    %54 = arith.mulf %21, %53 : vector<16x128xf32>
    %55 = arith.addf %54, %24 : vector<16x128xf32>
    %56 = vector.extract_strided_slice %55 {offsets = [0, 0], sizes = [16, 32], strides = [1, 1]} : vector<16x128xf32> to vector<16x32xf32>
    %57 = vector.extract_strided_slice %55 {offsets = [0, 32], sizes = [16, 32], strides = [1, 1]} : vector<16x128xf32> to vector<16x32xf32>
    %58 = vector.extract_strided_slice %55 {offsets = [0, 64], sizes = [16, 32], strides = [1, 1]} : vector<16x128xf32> to vector<16x32xf32>
    %59 = vector.extract_strided_slice %55 {offsets = [0, 96], sizes = [16, 32], strides = [1, 1]} : vector<16x128xf32> to vector<16x32xf32>
    %60 = arith.mulf %57, %41 : vector<16x32xf32>
    %61 = arith.mulf %56, %58 : vector<16x32xf32>
    %62 = arith.addf %60, %61 : vector<16x32xf32>
    %63 = math.tanh %62 : vector<16x32xf32>
    %64 = arith.mulf %59, %63 : vector<16x32xf32>
    %c2_i32 = arith.constant 2 : i32
    %65 = vector.broadcast %c2_i32 : i32 to vector<16x1xi32>
    %66 = arith.cmpi eq, %12, %65 : vector<16x1xi32>
    %67 = vector.shape_cast %66 : vector<16x1xi1> to vector<16x1xi1>
    %68 = vector.broadcast %67 : vector<16x1xi1> to vector<16x32xi1>
    %69 = arith.select %68, %64, %48 : vector<16x32xi1>, vector<16x32xf32>
    %70 = vector.extract_strided_slice %7 {offsets = [32, 0], sizes = [16, 128], strides = [1, 1]} : vector<96x128xf32> to vector<16x128xf32>
    %cst_16 = arith.constant dense<0.000000e+00> : vector<16x128xf32>
    %71 = tpu.matmul %64, %9, %cst_16 {dimension_numbers = #tpu.dot_dimension_numbers<[1], [0], [0], [1], [0, 0, 1, 1], [], []>} : vector<16x32xf32>, vector<32x128xf32>, vector<16x128xf32> -> vector<16x128xf32>
    %72 = arith.addf %70, %71 : vector<16x128xf32>
    %73 = arith.mulf %21, %72 : vector<16x128xf32>
    %74 = math.tanh %73 : vector<16x128xf32>
    %75 = arith.mulf %21, %74 : vector<16x128xf32>
    %76 = arith.addf %75, %24 : vector<16x128xf32>
    %77 = vector.extract_strided_slice %76 {offsets = [0, 0], sizes = [16, 32], strides = [1, 1]} : vector<16x128xf32> to vector<16x32xf32>
    %78 = vector.extract_strided_slice %76 {offsets = [0, 32], sizes = [16, 32], strides = [1, 1]} : vector<16x128xf32> to vector<16x32xf32>
    %79 = vector.extract_strided_slice %76 {offsets = [0, 64], sizes = [16, 32], strides = [1, 1]} : vector<16x128xf32> to vector<16x32xf32>
    %80 = vector.extract_strided_slice %76 {offsets = [0, 96], sizes = [16, 32], strides = [1, 1]} : vector<16x128xf32> to vector<16x32xf32>
    %81 = arith.mulf %78, %62 : vector<16x32xf32>
    %82 = arith.mulf %77, %79 : vector<16x32xf32>
    %83 = arith.addf %81, %82 : vector<16x32xf32>
    %84 = math.tanh %83 : vector<16x32xf32>
    %85 = arith.mulf %80, %84 : vector<16x32xf32>
    %c3_i32 = arith.constant 3 : i32
    %86 = vector.broadcast %c3_i32 : i32 to vector<16x1xi32>
    %87 = arith.cmpi eq, %12, %86 : vector<16x1xi32>
    %88 = vector.shape_cast %87 : vector<16x1xi1> to vector<16x1xi1>
    %89 = vector.broadcast %88 : vector<16x1xi1> to vector<16x32xi1>
    %90 = arith.select %89, %85, %69 : vector<16x32xi1>, vector<16x32xf32>
    %91 = vector.extract_strided_slice %7 {offsets = [48, 0], sizes = [16, 128], strides = [1, 1]} : vector<96x128xf32> to vector<16x128xf32>
    %cst_17 = arith.constant dense<0.000000e+00> : vector<16x128xf32>
    %92 = tpu.matmul %85, %9, %cst_17 {dimension_numbers = #tpu.dot_dimension_numbers<[1], [0], [0], [1], [0, 0, 1, 1], [], []>} : vector<16x32xf32>, vector<32x128xf32>, vector<16x128xf32> -> vector<16x128xf32>
    %93 = arith.addf %91, %92 : vector<16x128xf32>
    %94 = arith.mulf %21, %93 : vector<16x128xf32>
    %95 = math.tanh %94 : vector<16x128xf32>
    %96 = arith.mulf %21, %95 : vector<16x128xf32>
    %97 = arith.addf %96, %24 : vector<16x128xf32>
    %98 = vector.extract_strided_slice %97 {offsets = [0, 0], sizes = [16, 32], strides = [1, 1]} : vector<16x128xf32> to vector<16x32xf32>
    %99 = vector.extract_strided_slice %97 {offsets = [0, 32], sizes = [16, 32], strides = [1, 1]} : vector<16x128xf32> to vector<16x32xf32>
    %100 = vector.extract_strided_slice %97 {offsets = [0, 64], sizes = [16, 32], strides = [1, 1]} : vector<16x128xf32> to vector<16x32xf32>
    %101 = vector.extract_strided_slice %97 {offsets = [0, 96], sizes = [16, 32], strides = [1, 1]} : vector<16x128xf32> to vector<16x32xf32>
    %102 = arith.mulf %99, %83 : vector<16x32xf32>
    %103 = arith.mulf %98, %100 : vector<16x32xf32>
    %104 = arith.addf %102, %103 : vector<16x32xf32>
    %105 = math.tanh %104 : vector<16x32xf32>
    %106 = arith.mulf %101, %105 : vector<16x32xf32>
    %c4_i32 = arith.constant 4 : i32
    %107 = vector.broadcast %c4_i32 : i32 to vector<16x1xi32>
    %108 = arith.cmpi eq, %12, %107 : vector<16x1xi32>
    %109 = vector.shape_cast %108 : vector<16x1xi1> to vector<16x1xi1>
    %110 = vector.broadcast %109 : vector<16x1xi1> to vector<16x32xi1>
    %111 = arith.select %110, %106, %90 : vector<16x32xi1>, vector<16x32xf32>
    %112 = vector.extract_strided_slice %7 {offsets = [64, 0], sizes = [16, 128], strides = [1, 1]} : vector<96x128xf32> to vector<16x128xf32>
    %cst_18 = arith.constant dense<0.000000e+00> : vector<16x128xf32>
    %113 = tpu.matmul %106, %9, %cst_18 {dimension_numbers = #tpu.dot_dimension_numbers<[1], [0], [0], [1], [0, 0, 1, 1], [], []>} : vector<16x32xf32>, vector<32x128xf32>, vector<16x128xf32> -> vector<16x128xf32>
    %114 = arith.addf %112, %113 : vector<16x128xf32>
    %115 = arith.mulf %21, %114 : vector<16x128xf32>
    %116 = math.tanh %115 : vector<16x128xf32>
    %117 = arith.mulf %21, %116 : vector<16x128xf32>
    %118 = arith.addf %117, %24 : vector<16x128xf32>
    %119 = vector.extract_strided_slice %118 {offsets = [0, 0], sizes = [16, 32], strides = [1, 1]} : vector<16x128xf32> to vector<16x32xf32>
    %120 = vector.extract_strided_slice %118 {offsets = [0, 32], sizes = [16, 32], strides = [1, 1]} : vector<16x128xf32> to vector<16x32xf32>
    %121 = vector.extract_strided_slice %118 {offsets = [0, 64], sizes = [16, 32], strides = [1, 1]} : vector<16x128xf32> to vector<16x32xf32>
    %122 = vector.extract_strided_slice %118 {offsets = [0, 96], sizes = [16, 32], strides = [1, 1]} : vector<16x128xf32> to vector<16x32xf32>
    %123 = arith.mulf %120, %104 : vector<16x32xf32>
    %124 = arith.mulf %119, %121 : vector<16x32xf32>
    %125 = arith.addf %123, %124 : vector<16x32xf32>
    %126 = math.tanh %125 : vector<16x32xf32>
    %127 = arith.mulf %122, %126 : vector<16x32xf32>
    %c5_i32 = arith.constant 5 : i32
    %128 = vector.broadcast %c5_i32 : i32 to vector<16x1xi32>
    %129 = arith.cmpi eq, %12, %128 : vector<16x1xi32>
    %130 = vector.shape_cast %129 : vector<16x1xi1> to vector<16x1xi1>
    %131 = vector.broadcast %130 : vector<16x1xi1> to vector<16x32xi1>
    %132 = arith.select %131, %127, %111 : vector<16x32xi1>, vector<16x32xf32>
    %133 = vector.extract_strided_slice %7 {offsets = [80, 0], sizes = [16, 128], strides = [1, 1]} : vector<96x128xf32> to vector<16x128xf32>
    %cst_19 = arith.constant dense<0.000000e+00> : vector<16x128xf32>
    %134 = tpu.matmul %127, %9, %cst_19 {dimension_numbers = #tpu.dot_dimension_numbers<[1], [0], [0], [1], [0, 0, 1, 1], [], []>} : vector<16x32xf32>, vector<32x128xf32>, vector<16x128xf32> -> vector<16x128xf32>
    %135 = arith.addf %133, %134 : vector<16x128xf32>
    %136 = arith.mulf %21, %135 : vector<16x128xf32>
    %137 = math.tanh %136 : vector<16x128xf32>
    %138 = arith.mulf %21, %137 : vector<16x128xf32>
    %139 = arith.addf %138, %24 : vector<16x128xf32>
    %140 = vector.extract_strided_slice %139 {offsets = [0, 0], sizes = [16, 32], strides = [1, 1]} : vector<16x128xf32> to vector<16x32xf32>
    %141 = vector.extract_strided_slice %139 {offsets = [0, 32], sizes = [16, 32], strides = [1, 1]} : vector<16x128xf32> to vector<16x32xf32>
    %142 = vector.extract_strided_slice %139 {offsets = [0, 64], sizes = [16, 32], strides = [1, 1]} : vector<16x128xf32> to vector<16x32xf32>
    %143 = vector.extract_strided_slice %139 {offsets = [0, 96], sizes = [16, 32], strides = [1, 1]} : vector<16x128xf32> to vector<16x32xf32>
    %144 = arith.mulf %141, %125 : vector<16x32xf32>
    %145 = arith.mulf %140, %142 : vector<16x32xf32>
    %146 = arith.addf %144, %145 : vector<16x32xf32>
    %147 = math.tanh %146 : vector<16x32xf32>
    %148 = arith.mulf %143, %147 : vector<16x32xf32>
    %c6_i32 = arith.constant 6 : i32
    %149 = vector.broadcast %c6_i32 : i32 to vector<16x1xi32>
    %150 = arith.cmpi eq, %12, %149 : vector<16x1xi32>
    %151 = vector.shape_cast %150 : vector<16x1xi1> to vector<16x1xi1>
    %152 = vector.broadcast %151 : vector<16x1xi1> to vector<16x32xi1>
    %153 = arith.select %152, %148, %132 : vector<16x32xi1>, vector<16x32xf32>
    %cst_20 = arith.constant dense<0.000000e+00> : vector<16x128xf32>
    %154 = tpu.matmul %153, %10, %cst_20 {dimension_numbers = #tpu.dot_dimension_numbers<[1], [0], [0], [1], [0, 0, 1, 1], [], []>} : vector<16x32xf32>, vector<32x128xf32>, vector<16x128xf32> -> vector<16x128xf32>
    %155 = vector.broadcast %11 : vector<1x128xf32> to vector<16x128xf32>
    %156 = arith.addf %154, %155 : vector<16x128xf32>
    %157 = tpu.iota {dimensions = array<i32: 1>} : vector<16x16xi32>
    %c0_21 = arith.constant 0 : index
    %c0_22 = arith.constant 0 : index
    %158 = vector.load %arg2[%c0_21, %c0_22] : memref<16x1xi32, #tpu.memory_space<vmem>>, vector<16x1xi32>
    %159 = vector.broadcast %158 : vector<16x1xi32> to vector<16x16xi32>
    %160 = arith.cmpi eq, %157, %159 : vector<16x16xi32>
    %161 = arith.extui %160 : vector<16x16xi1> to vector<16x16xi32>
    %162 = arith.sitofp %161 : vector<16x16xi32> to vector<16x16xf32>
    %cst_23 = arith.constant dense<0.000000e+00> : vector<16x128xf32>
    %163 = tpu.matmul %162, %156, %cst_23 {dimension_numbers = #tpu.dot_dimension_numbers<[1], [0], [0], [1], [0, 0, 1, 1], [], []>} : vector<16x16xf32>, vector<16x128xf32>, vector<16x128xf32> -> vector<16x128xf32>
    %c0_24 = arith.constant 0 : index
    %c0_25 = arith.constant 0 : index
    %164 = vector.load %arg5[%c0_24, %c0_25] : memref<16x128xf32, #tpu.memory_space<vmem>>, vector<16x128xf32>
    tpu.vector_store %arg5[%c0_24, %c0_25], %163 {strides = array<i32>} : memref<16x128xf32, #tpu.memory_space<vmem>>, vector<16x128xf32>,
    return
  }
}

</mosaic_0001>

<bundles_post_ra>
// kernel: tpu_custom_call.1
= control target key start
LH: loop header
LB: loop body
LE: loop exit
PB: predicated region body
PF: predicated region fallthrough
CT: control target
= control target key end

     0   :  { %10 = vsyncpa [#allocation3], 0  ;;  %s2197_s0 = inlined_call_operand.vmem [shape: s32[96,1], index: 0, kind: input, shape index: {}]   ;;  %s2198_s1 = inlined_call_operand.vmem [shape: s32[16,1], index: 1, kind: input, shape index: {}]   ;;  %s2199_s2 = inlined_call_operand.vmem [shape: s32[16,1], index: 2, kind: input, shape index: {}]   ;;  %s2200_s3 = inlined_call_operand.vmem [shape: f32[128,128], index: 3, kind: input, shape index: {}]   ;;  %s2201_s4 = inlined_call_operand.hbm [shape: f32[65,128], index: 4, kind: input, shape index: {}]   ;;  %s2202_s5 = inlined_call_operand.hbm [shape: f32[16,128], index: 5, kind: output, shape index: {}]  }
   0x1   :  { %11 = vsyncpa [#allocation4], 0  ;;  %s1795_s18 = smov [#allocation2]   ;;  %s1747_s22 = scalar_lea.hbm %s2201_s4, 1152 }
   0x2   :  { %s25_s19 = sshll.u32 %s1795_s18, 4  ;;  %p1748_p0 = scmp.ne.s32.totalorder %s2201_s4, %s1747_s22  ;;  %s26_s19 = int_to_ptr.vmem [resolvable:$true] %s25_s19 }
   0x3   :  { %p1751_p1 = scmp.lt.u32.totalorder %s1747_s22, %s2201_s4 }
   0x5   :  { %p1753_p2 = pnand %p1751_p1, %p1748_p0 }
   0x7   :  { %1756 = shalt.err (!%p1753_p2)
}
   0x8   :  { %s1757_s27 = scalar_lea.vmem %s26_s19, 1152  ;;  %p1762_p4 = scmp.lt.s32.totalorder %s26_s19, %s26_s19 }
   0x9   :  { %p1758_p3 = scmp.ne.s32.totalorder %s26_s19, %s1757_s27  ;;  %p1763_p5 = scmp.lt.s32.totalorder %s1757_s27, %s1757_s27 }
   0xb   :  { %p1764_p6 = por %p1763_p5, %p1762_p4 }
   0xd   :  { %p1765_p7 = pnand %p1764_p6, %p1758_p3 }
   0xf   :  { %1768 = shalt.err (!%p1765_p7)
}
  0x10   :  { %s1796_s28 = smov 128   ;;  %s1797_s29 = smov 8  }
  0x11   :  { %31 = dma.hbm_to_vmem [thread:$0]  %s2201_s4, 1152, %s26_s19, [#allocation3], %s1796_s28, %s1796_s28, %s1797_s29  }
  0x12   :  { %1791 = dma.done.wait [#allocation3], 1152  }
  0x13   :  { %1792 = vsyncadd [#allocation3], 4294966144  ;;  %v1798_v0 = vmov 0   ;;  %v37_v1 = vld [vmem:[%s2197_s0] sm:$0xff]  ;;  %v122_v3 = vld [vmem:[%s2200_s3 + $0x8] sm:$0xff]  ;;  %v1799_v11 = vmov 0.0   ;;  %v35_v34 = vlaneseq }
  0x14   :  { %1697 = vset.pattern.permute.xlu0 %v1798_v0  ;;  %1698 = vset.pattern.permute.xlu1 %v1798_v0  ;;  %v121_v2 = vld [vmem:[%s2200_s3] sm:$0xff]  ;;  %v123_v4 = vld [vmem:[%s2200_s3 + $0x10] sm:$0xff]  ;;  %v124_v5 = vld [vmem:[%s2200_s3 + $0x18] sm:$0xff]  ;;  %v1800_v37 = vmov 1.0   ;;  %v1801_v42 = vmov 0.5   ;;  %s1803_s18 = smov 32  }
  0x15   :  { %50 = vperm.xlu0 %1697, %v37_v1   ;;  %v38_v6 = vld [vmem:[%s2197_s0 + $0x8] sm:$0xff]  ;;  %v1583_v7 = vpack.c.bf16 %v122_v3, %v121_v2  ;;  %v1587_v8 = vpack.c.bf16 %v124_v5, %v123_v4  ;;  %v125_v9 = vld [vmem:[%s2200_s3 + $0x20] sm:$0xff]  ;;  %1507 = vmatprep.mubr.f32.mxu0 %v1799_v11  ;;  %v264_v16 = vld [vmem:[#allocation2 + $0x10] sm:$0xff]  ;;  %v1921_v35 = vand.u32 127, %v35_v34  ;;  %vm278_vm7 = vcmask 261120  }
  0x16   :  { %v126_v10 = vld [vmem:[%s2200_s3 + $0x28] sm:$0xff]  ;;  %v262_v12 = vld [vmem:[#allocation2] sm:$0xff]  ;;  %v265_v17 = vld [vmem:[#allocation2 + $0x18] sm:$0xff] }
  0x17   :  { %1584 = vmatprep.subr.bf16.mxu1 %v1583_v7  ;;  %v263_v13 = vld [vmem:[#allocation2 + $0x8] sm:$0xff]  ;;  %v1591_v14 = vpack.c.bf16 %v126_v10, %v125_v9  ;;  %v127_v18 = vld [vmem:[%s2200_s3 + $0x30] sm:$0xff]  ;;  %v128_v19 = vld [vmem:[%s2200_s3 + $0x38] sm:$0xff]  ;;  %v1885_v20 = vpack.c.bf16 %v265_v17, %v264_v16  ;;  %vm273_vm2 = vcmp.ge.s32.totalorder %v1921_v35, 64  ;;  %vm274_vm3 = vcmp.lt.s32.totalorder %v1921_v35, 96 }
  0x18   :  { %1586 = vmatpush3.bf16.msra.mxu1 %v1583_v7  ;;  %v1877_v15 = vpack.c.bf16 %v263_v13, %v262_v12  ;;  %v1595_v21 = vpack.c.bf16 %v128_v19, %v127_v18  ;;  %v129_v22 = vld [vmem:[%s2200_s3 + $0x40] sm:$0xff]  ;;  %v130_v23 = vld [vmem:[%s2200_s3 + $0x48] sm:$0xff]  ;;  %v131_v25 = vld [vmem:[%s2200_s3 + $0x50] sm:$0xff] }
  0x19   :  { %53 = vperm.xlu0 %1697, %v38_v6   ;;  %1588 = vmatprep.subr.bf16.mxu1 %v1587_v8  ;;  %v1599_v24 = vpack.c.bf16 %v130_v23, %v129_v22  ;;  %v132_v26 = vld [vmem:[%s2200_s3 + $0x58] sm:$0xff]  ;;  %v133_v28 = vld [vmem:[%s2200_s3 + $0x60] sm:$0xff]  ;;  %v134_v29 = vld [vmem:[%s2200_s3 + $0x68] sm:$0xff] }
  0x1a   :  { %1616 = vmatprep.subr.bf16.mxu0 %v1877_v15  ;;  %v1603_v27 = vpack.c.bf16 %v132_v26, %v131_v25  ;;  %v1607_v30 = vpack.c.bf16 %v134_v29, %v133_v28  ;;  %v135_v31 = vld [vmem:[%s2200_s3 + $0x70] sm:$0xff]  ;;  %v136_v32 = vld [vmem:[%s2200_s3 + $0x78] sm:$0xff]  ;;  %vm275_vm4 = vmand %vm273_vm2, %vm274_vm3  ;;  %s1802_s3 = smov 64  }
  0x1b   :  { %1618 = vmatpush3.bf16.msra.mxu0 %v1877_v15  ;;  %v1611_v33 = vpack.c.bf16 %v136_v32, %v135_v31  ;;  %v1929_v43 = vsel %vm275_vm4, 1.0, %v1801_v42  ;;  %v1933_v51 = vsel %vm275_vm4, 0.0, %v1801_v42  ;;  %v39_v4 = vld [vmem:[%s2197_s0 + $0x10] sm:$0xff]  ;;  %v40_v6 = vld [vmem:[%s2197_s0 + $0x18] sm:$0xff] }
  0x1c   :  { %1590 = vmatpush3.bf16.msra.mxu1 %v1587_v8  ;;  %1620 = vmatprep.subr.bf16.mxu0 %v1885_v20 }
  0x1d   :  { %1592 = vmatprep.subr.bf16.mxu1 %v1591_v14 }
  0x1f   :  { %1622 = vmatpush3.bf16.msra.mxu0 %v1885_v20 }
  0x20   :  { %1594 = vmatpush3.bf16.msra.mxu1 %v1591_v14  ;;  %1624 = vmatprep.subr.bf16.mxu0 %v1877_v15 }
  0x21   :  { %1596 = vmatprep.subr.bf16.mxu1 %v1595_v21 }
  0x22   :  { %1508 = vmatmul.mubr.f32.vlgmr.msra.gmra.mrb[0].mxu0 %v1799_v11 }
  0x23   :  { %1626 = vmatpush3.bf16.msra.mxu0 %v1877_v15 }
  0x24   :  { %1598 = vmatpush3.bf16.msra.mxu1 %v1595_v21  ;;  %1628 = vmatprep.subr.bf16.mxu0 %v1885_v20 }
  0x25   :  { %1600 = vmatprep.subr.bf16.mxu1 %v1599_v24 }
  0x27   :  { %1630 = vmatpush3.bf16.msra.mxu0 %v1885_v20 }
  0x28   :  { %1602 = vmatpush3.bf16.msra.mxu1 %v1599_v24  ;;  %1632 = vmatprep.subr.bf16.mxu0 %v1877_v15 }
  0x29   :  { %1604 = vmatprep.subr.bf16.mxu1 %v1603_v27 }
  0x2c   :  { %1606 = vmatpush3.bf16.msra.mxu1 %v1603_v27 }
  0x2d   :  { %1608 = vmatprep.subr.bf16.mxu1 %v1607_v30 }
  0x30   :  { %1610 = vmatpush3.bf16.msra.mxu1 %v1607_v30 }
  0x31   :  { %1612 = vmatprep.subr.bf16.mxu1 %v1611_v33 }
  0x34   :  { %1614 = vmatpush3.bf16.msra.mxu1 %v1611_v33 }
  0x94   :  { %v51_v36 = vpop.permute.xlu0 %50 }
  0x95   :  { %vm85_vm0 = vcmp.eq.s32.totalorder %v1921_v35, %v51_v36 }
  0x96   :  { %1481 = vmatprep.mubr.msk.f32.mxu1 %vm85_vm0, %v1800_v37 }
  0x98   :  { %v54_v38 = vpop.permute.xlu0 %53 }
  0x99   :  { %vm86_vm1 = vcmp.eq.s32.totalorder %v1921_v35, %v54_v38 }
  0x9a   :  { %1482 = vmatmul.mubr.msk.f32.vlgmr.msra.gmra.mrb[0].mxu1 %vm86_vm1, %v1800_v37 }
  0xf5   :  { %v1509_v39 = vpop.f32.mrb[0].mxu0 }
  0xf6   :  { %v348_v40 = vpop.f32.mrb[1].mxu0 }
 0x16d   :  { %v1483_v41 = vpop.f32.mrb[0].mxu1 }
 0x16e   :  { %v358_v44 = vadd.f32 %v1509_v39, %v1483_v41  ;;  %v203_v45 = vpop.f32.mrb[1].mxu1 }
 0x16f   :  { %v357_v46 = vadd.f32 %v348_v40, %v203_v45 }
 0x170   :  { %v360_v47 = vmul.f32 %v358_v44, %v1929_v43 }
 0x171   :  { %v359_v48 = vmul.f32 %v357_v46, %v1929_v43 }
 0x172   :  { %1699 = vtanh.f32 %v360_v47  ;;  %v42_v47 = vld [vmem:[%s2197_s0 + $0x28] sm:$0xff] }
 0x173   :  { %1701 = vtanh.f32 %v359_v48  ;;  %v41_v48 = vld [vmem:[%s2197_s0 + $0x20] sm:$0xff] }
 0x17c   :  { %v1700_v49 = vpop.eup %1699 }
 0x17d   :  { %v1702_v50 = vpop.eup %1701  ;;  %v364_v54 = vmul.f32 %v1700_v49, %v1929_v43 }
 0x17e   :  { %v363_v52 = vmul.f32 %v1702_v50, %v1929_v43 }
 0x17f   :  { %v366_v55 = vadd.f32 %v364_v54, %v1933_v51 }
 0x180   :  { %v365_v53 = vadd.f32 %v363_v52, %v1933_v51 }
 0x181   :  { %v368_v63 = vmul.f32 0.0, %v366_v55 }
 0x182   :  { %371 = vrot.lane.b32.xlu1 %v365_v53, %s1802_s3  ;;  %v367_v60 = vmul.f32 0.0, %v365_v53 }
 0x186   :  { %373 = vrot.lane.b32.xlu1 %v366_v55, %s1802_s3 }
 0x1f4   :  { %v372_v56 = vpop.permute.xlu1 %371 }
 0x1f5   :  { %v377_v57 = vmul.f32 %v372_v56, %v365_v53 }
 0x1f7   :  { %381 = vrot.lane.b32.xlu0 %v377_v57, %s1803_s18 }
 0x1f8   :  { %v374_v58 = vpop.permute.xlu1 %373 }
 0x1f9   :  { %v378_v59 = vmul.f32 %v374_v58, %v366_v55 }
 0x1fb   :  { %383 = vrot.lane.b32.xlu1 %v378_v59, %s1803_s18 }
 0x269   :  { %v382_v61 = vpop.permute.xlu0 %381 }
 0x26a   :  { %v387_v62 = vadd.f32 %v382_v61, %v367_v60 }
 0x26c   :  { %1703 = vtanh.f32 %v387_v62 }
 0x26d   :  { %v384_v1 = vpop.permute.xlu1 %383 }
 0x26e   :  { %v388_v2 = vadd.f32 %v384_v1, %v368_v63 }
 0x270   :  { %1705 = vtanh.f32 %v388_v2 }
 0x276   :  { %v1704_v3 = vpop.eup %1703 }
 0x277   :  { %393 = vrot.lane.b32.xlu0 %v1704_v3, %s1802_s3 }
 0x27a   :  { %v1706_v5 = vpop.eup %1705 }
 0x27b   :  { %395 = vrot.lane.b32.xlu1 %v1706_v5, %s1802_s3  ;;  %56 = vperm.xlu0 %1697, %v39_v4  }
 0x27f   :  { %59 = vperm.xlu1 %1698, %v40_v6  }
 0x2e9   :  { %v394_v7 = vpop.permute.xlu0 %393 }
 0x2ea   :  { %v1951_v8 = vmul.f32 %v394_v7, %v365_v53 }
 0x2ec   :  { %417 = vrot.lane.b32.xlu0 %v1951_v8, %s1803_s18 }
 0x2ed   :  { %v396_v9 = vpop.permute.xlu1 %395 }
 0x2ee   :  { %v1955_v10 = vmul.f32 %v396_v9, %v366_v55 }
 0x2f0   :  { %419 = vrot.lane.b32.xlu1 %v1955_v10, %s1803_s18 }
 0x2fa   :  { %v57_v12 = vpop.permute.xlu0 %56 }
 0x2fb   :  { %vm87_vm5 = vcmp.eq.s32.totalorder %v1921_v35, %v57_v12 }
 0x2fc   :  { %1484 = vmatprep.mubr.msk.f32.mxu1 %vm87_vm5, %v1800_v37 }
 0x2fe   :  { %v60_v13 = vpop.permute.xlu1 %59 }
 0x2ff   :  { %vm88_vm6 = vcmp.eq.s32.totalorder %v1921_v35, %v60_v13 }
 0x300   :  { %1485 = vmatmul.mubr.msk.f32.gmra.mrb[2].mxu1 %vm88_vm6, %v1800_v37 }
 0x35e   :  { %v418_v14 = vpop.permute.xlu0 %417 }
 0x35f   :  { %1518 = vmatprep.mubr.msk.f32.mxu0 %vm278_vm7, %v418_v14 }
 0x362   :  { %v420_v16 = vpop.permute.xlu1 %419 }
 0x363   :  { %1519 = vmatmul.mubr.msk.f32.vlgmr.msra.gmra.mrb[2].mxu0 %vm278_vm7, %v420_v16 }
 0x364   :  { %1634 = vmatpush3.bf16.msra.mxu0 %v1877_v15 }
 0x365   :  { %1636 = vmatprep.subr.bf16.mxu0 %v1885_v20 }
 0x368   :  { %1638 = vmatpush3.bf16.msra.mxu0 %v1885_v20 }
 0x369   :  { %1640 = vmatprep.subr.bf16.mxu0 %v1877_v15 }
 0x3d3   :  { %v1486_v17 = vpop.f32.mrb[2].mxu1 }
 0x3d4   :  { %v213_v18 = vpop.f32.mrb[3].mxu1 }
 0x436   :  { %v1520_v19 = vpop.f32.mrb[2].mxu0 }
 0x437   :  { %v501_v21 = vadd.f32 %v1520_v19, %v1486_v17  ;;  %v491_v22 = vpop.f32.mrb[3].mxu0 }
 0x438   :  { %v500_v23 = vadd.f32 %v491_v22, %v213_v18 }
 0x439   :  { %v503_v24 = vmul.f32 %v501_v21, %v1929_v43 }
 0x43a   :  { %v502_v25 = vmul.f32 %v500_v23, %v1929_v43 }
 0x43b   :  { %1707 = vtanh.f32 %v503_v24 }
 0x43c   :  { %1709 = vtanh.f32 %v502_v25 }
 0x445   :  { %v1708_v26 = vpop.eup %1707 }
 0x446   :  { %v1710_v27 = vpop.eup %1709  ;;  %v507_v28 = vmul.f32 %v1708_v26, %v1929_v43  ;;  %v44_v26 = vld [vmem:[%s2197_s0 + $0x38] sm:$0xff] }
 0x447   :  { %v506_v29 = vmul.f32 %v1710_v27, %v1929_v43  ;;  %v43_v27 = vld [vmem:[%s2197_s0 + $0x30] sm:$0xff] }
 0x448   :  { %v509_v30 = vadd.f32 %v507_v28, %v1933_v51 }
 0x449   :  { %v508_v31 = vadd.f32 %v506_v29, %v1933_v51 }
 0x44a   :  { %516 = vrot.lane.b32.xlu1 %v509_v30, %s1802_s3  ;;  %v511_v38 = vmul.f32 %v509_v30, %v388_v2 }
 0x44b   :  { %514 = vrot.lane.b32.xlu0 %v508_v31, %s1802_s3  ;;  %v510_v40 = vmul.f32 %v508_v31, %v387_v62 }
 0x4bc   :  { %v517_v32 = vpop.permute.xlu1 %516 }
 0x4bd   :  { %v521_v33 = vmul.f32 %v517_v32, %v509_v30  ;;  %v515_v34 = vpop.permute.xlu0 %514 }
 0x4be   :  { %v520_v36 = vmul.f32 %v515_v34, %v508_v31 }
 0x4bf   :  { %526 = vrot.lane.b32.xlu1 %v521_v33, %s1803_s18 }
 0x4c0   :  { %524 = vrot.lane.b32.xlu0 %v520_v36, %s1803_s18 }
 0x531   :  { %v527_v39 = vpop.permute.xlu1 %526 }
 0x532   :  { %v531_v41 = vadd.f32 %v527_v39, %v511_v38  ;;  %v525_v42 = vpop.permute.xlu0 %524 }
 0x533   :  { %v530_v44 = vadd.f32 %v525_v42, %v510_v40 }
 0x534   :  { %1711 = vtanh.f32 %v531_v41 }
 0x535   :  { %1713 = vtanh.f32 %v530_v44 }
 0x53e   :  { %v1712_v45 = vpop.eup %1711 }
 0x53f   :  { %v1714_v46 = vpop.eup %1713  ;;  %538 = vrot.lane.b32.xlu1 %v1712_v45, %s1802_s3 }
 0x540   :  { %536 = vrot.lane.b32.xlu0 %v1714_v46, %s1802_s3 }
 0x543   :  { %65 = vperm.xlu1 %1698, %v42_v47  }
 0x544   :  { %62 = vperm.xlu0 %1697, %v41_v48  }
 0x5b1   :  { %v539_v49 = vpop.permute.xlu1 %538 }
 0x5b2   :  { %v1987_v50 = vmul.f32 %v539_v49, %v509_v30  ;;  %v537_v52 = vpop.permute.xlu0 %536 }
 0x5b3   :  { %v1989_v53 = vmul.f32 %v537_v52, %v508_v31 }
 0x5b4   :  { %562 = vrot.lane.b32.xlu1 %v1987_v50, %s1803_s18 }
 0x5b5   :  { %560 = vrot.lane.b32.xlu0 %v1989_v53, %s1803_s18 }
 0x5c2   :  { %v66_v54 = vpop.permute.xlu1 %65 }
 0x5c3   :  { %v63_v55 = vpop.permute.xlu0 %62  ;;  %vm90_vm9 = vcmp.eq.s32.totalorder %v1921_v35, %v66_v54 }
 0x5c4   :  { %vm89_vm8 = vcmp.eq.s32.totalorder %v1921_v35, %v63_v55 }
 0x5c5   :  { %1487 = vmatprep.mubr.msk.f32.mxu1 %vm89_vm8, %v1800_v37 }
 0x5c6   :  { %1488 = vmatmul.mubr.msk.f32.gmra.mrb[4].mxu1 %vm90_vm9, %v1800_v37 }
 0x626   :  { %v563_v57 = vpop.permute.xlu1 %562 }
 0x627   :  { %v561_v56 = vpop.permute.xlu0 %560 }
 0x628   :  { %1529 = vmatprep.mubr.msk.f32.mxu0 %vm278_vm7, %v561_v56 }
 0x629   :  { %1530 = vmatmul.mubr.msk.f32.vlgmr.msra.gmra.mrb[4].mxu0 %vm278_vm7, %v563_v57 }
 0x62a   :  { %1642 = vmatpush3.bf16.msra.mxu0 %v1877_v15 }
 0x62b   :  { %1644 = vmatprep.subr.bf16.mxu0 %v1885_v20 }
 0x62e   :  { %1646 = vmatpush3.bf16.msra.mxu0 %v1885_v20 }
 0x62f   :  { %1648 = vmatprep.subr.bf16.mxu0 %v1877_v15 }
 0x699   :  { %v1489_v58 = vpop.f32.mrb[4].mxu1 }
 0x69a   :  { %v223_v59 = vpop.f32.mrb[5].mxu1 }
 0x6fc   :  { %v1531_v60 = vpop.f32.mrb[4].mxu0 }
 0x6fd   :  { %v644_v61 = vadd.f32 %v1531_v60, %v1489_v58  ;;  %v634_v62 = vpop.f32.mrb[5].mxu0 }
 0x6fe   :  { %v643_v63 = vadd.f32 %v634_v62, %v223_v59 }
 0x6ff   :  { %v646_v1 = vmul.f32 %v644_v61, %v1929_v43 }
 0x700   :  { %v645_v2 = vmul.f32 %v643_v63, %v1929_v43 }
 0x701   :  { %1715 = vtanh.f32 %v646_v1 }
 0x702   :  { %1717 = vtanh.f32 %v645_v2 }
 0x70b   :  { %v1716_v3 = vpop.eup %1715 }
 0x70c   :  { %v1718_v4 = vpop.eup %1717  ;;  %v650_v5 = vmul.f32 %v1716_v3, %v1929_v43 }
 0x70d   :  { %v649_v6 = vmul.f32 %v1718_v4, %v1929_v43 }
 0x70e   :  { %v652_v7 = vadd.f32 %v650_v5, %v1933_v51  ;;  %v46_v5 = vld [vmem:[%s2197_s0 + $0x48] sm:$0xff] }
 0x70f   :  { %v651_v9 = vadd.f32 %v649_v6, %v1933_v51  ;;  %v45_v6 = vld [vmem:[%s2197_s0 + $0x40] sm:$0xff] }
 0x710   :  { %659 = vrot.lane.b32.xlu1 %v652_v7, %s1802_s3  ;;  %v654_v17 = vmul.f32 %v652_v7, %v531_v41 }
 0x711   :  { %657 = vrot.lane.b32.xlu0 %v651_v9, %s1802_s3  ;;  %v653_v19 = vmul.f32 %v651_v9, %v530_v44 }
 0x782   :  { %v660_v12 = vpop.permute.xlu1 %659 }
 0x783   :  { %v664_v13 = vmul.f32 %v660_v12, %v652_v7  ;;  %v658_v14 = vpop.permute.xlu0 %657 }
 0x784   :  { %v663_v16 = vmul.f32 %v658_v14, %v651_v9 }
 0x785   :  { %669 = vrot.lane.b32.xlu1 %v664_v13, %s1803_s18 }
 0x786   :  { %667 = vrot.lane.b32.xlu0 %v663_v16, %s1803_s18 }
 0x7f7   :  { %v670_v18 = vpop.permute.xlu1 %669 }
 0x7f8   :  { %v674_v21 = vadd.f32 %v670_v18, %v654_v17  ;;  %v668_v22 = vpop.permute.xlu0 %667 }
 0x7f9   :  { %v673_v23 = vadd.f32 %v668_v22, %v653_v19 }
 0x7fa   :  { %1719 = vtanh.f32 %v674_v21 }
 0x7fb   :  { %1721 = vtanh.f32 %v673_v23 }
 0x804   :  { %v1720_v24 = vpop.eup %1719 }
 0x805   :  { %v1722_v25 = vpop.eup %1721  ;;  %681 = vrot.lane.b32.xlu1 %v1720_v24, %s1802_s3 }
 0x806   :  { %679 = vrot.lane.b32.xlu0 %v1722_v25, %s1802_s3 }
 0x809   :  { %71 = vperm.xlu1 %1698, %v44_v26  }
 0x80a   :  { %68 = vperm.xlu0 %1697, %v43_v27  }
 0x877   :  { %v682_v28 = vpop.permute.xlu1 %681 }
 0x878   :  { %v2023_v29 = vmul.f32 %v682_v28, %v652_v7  ;;  %v680_v30 = vpop.permute.xlu0 %679 }
 0x879   :  { %v2025_v31 = vmul.f32 %v680_v30, %v651_v9 }
 0x87a   :  { %705 = vrot.lane.b32.xlu1 %v2023_v29, %s1803_s18 }
 0x87b   :  { %703 = vrot.lane.b32.xlu0 %v2025_v31, %s1803_s18 }
 0x888   :  { %v72_v32 = vpop.permute.xlu1 %71 }
 0x889   :  { %v69_v33 = vpop.permute.xlu0 %68  ;;  %vm92_vm11 = vcmp.eq.s32.totalorder %v1921_v35, %v72_v32 }
 0x88a   :  { %vm91_vm10 = vcmp.eq.s32.totalorder %v1921_v35, %v69_v33 }
 0x88b   :  { %1490 = vmatprep.mubr.msk.f32.mxu1 %vm91_vm10, %v1800_v37 }
 0x88c   :  { %1491 = vmatmul.mubr.msk.f32.gmra.mrb[6].mxu1 %vm92_vm11, %v1800_v37 }
 0x8ec   :  { %v706_v36 = vpop.permute.xlu1 %705 }
 0x8ed   :  { %v704_v34 = vpop.permute.xlu0 %703 }
 0x8ee   :  { %1540 = vmatprep.mubr.msk.f32.mxu0 %vm278_vm7, %v704_v34 }
 0x8ef   :  { %1541 = vmatmul.mubr.msk.f32.vlgmr.msra.gmra.mrb[6].mxu0 %vm278_vm7, %v706_v36 }
 0x8f0   :  { %1650 = vmatpush3.bf16.msra.mxu0 %v1877_v15 }
 0x8f1   :  { %1652 = vmatprep.subr.bf16.mxu0 %v1885_v20 }
 0x8f4   :  { %1654 = vmatpush3.bf16.msra.mxu0 %v1885_v20 }
 0x8f5   :  { %1656 = vmatprep.subr.bf16.mxu0 %v1877_v15 }
 0x95f   :  { %v1492_v38 = vpop.f32.mrb[6].mxu1 }
 0x960   :  { %v233_v39 = vpop.f32.mrb[7].mxu1 }
 0x9c2   :  { %v1542_v40 = vpop.f32.mrb[6].mxu0 }
 0x9c3   :  { %v787_v41 = vadd.f32 %v1542_v40, %v1492_v38  ;;  %v777_v42 = vpop.f32.mrb[7].mxu0 }
 0x9c4   :  { %v786_v44 = vadd.f32 %v777_v42, %v233_v39 }
 0x9c5   :  { %v789_v45 = vmul.f32 %v787_v41, %v1929_v43 }
 0x9c6   :  { %v788_v46 = vmul.f32 %v786_v44, %v1929_v43 }
 0x9c7   :  { %1723 = vtanh.f32 %v789_v45 }
 0x9c8   :  { %1725 = vtanh.f32 %v788_v46 }
 0x9d1   :  { %v1724_v47 = vpop.eup %1723 }
 0x9d2   :  { %v1726_v48 = vpop.eup %1725  ;;  %v793_v49 = vmul.f32 %v1724_v47, %v1929_v43 }
 0x9d3   :  { %v792_v52 = vmul.f32 %v1726_v48, %v1929_v43 }
 0x9d4   :  { %v795_v54 = vadd.f32 %v793_v49, %v1933_v51  ;;  %v48_v49 = vld [vmem:[%s2197_s0 + $0x58] sm:$0xff] }
 0x9d5   :  { %v794_v55 = vadd.f32 %v792_v52, %v1933_v51  ;;  %v47_v52 = vld [vmem:[%s2197_s0 + $0x50] sm:$0xff] }
 0x9d6   :  { %802 = vrot.lane.b32.xlu1 %v795_v54, %s1802_s3  ;;  %v797_v60 = vmul.f32 %v795_v54, %v674_v21 }
 0x9d7   :  { %800 = vrot.lane.b32.xlu0 %v794_v55, %s1802_s3  ;;  %v796_v62 = vmul.f32 %v794_v55, %v673_v23 }
 0xa48   :  { %v803_v56 = vpop.permute.xlu1 %802 }
 0xa49   :  { %v807_v57 = vmul.f32 %v803_v56, %v795_v54  ;;  %v801_v58 = vpop.permute.xlu0 %800 }
 0xa4a   :  { %v806_v59 = vmul.f32 %v801_v58, %v794_v55 }
 0xa4b   :  { %812 = vrot.lane.b32.xlu1 %v807_v57, %s1803_s18 }
 0xa4c   :  { %810 = vrot.lane.b32.xlu0 %v806_v59, %s1803_s18 }
 0xabd   :  { %v813_v61 = vpop.permute.xlu1 %812 }
 0xabe   :  { %v817_v63 = vadd.f32 %v813_v61, %v797_v60  ;;  %v811_v1 = vpop.permute.xlu0 %810 }
 0xabf   :  { %v816_v2 = vadd.f32 %v811_v1, %v796_v62 }
 0xac0   :  { %1727 = vtanh.f32 %v817_v63 }
 0xac1   :  { %1729 = vtanh.f32 %v816_v2 }
 0xaca   :  { %v1728_v3 = vpop.eup %1727 }
 0xacb   :  { %v1730_v4 = vpop.eup %1729  ;;  %824 = vrot.lane.b32.xlu1 %v1728_v3, %s1802_s3 }
 0xacc   :  { %822 = vrot.lane.b32.xlu0 %v1730_v4, %s1802_s3 }
 0xacf   :  { %77 = vperm.xlu1 %1698, %v46_v5  }
 0xad0   :  { %74 = vperm.xlu0 %1697, %v45_v6  }
 0xb3d   :  { %v825_v7 = vpop.permute.xlu1 %824 }
 0xb3e   :  { %v2059_v9 = vmul.f32 %v825_v7, %v795_v54  ;;  %v823_v12 = vpop.permute.xlu0 %822 }
 0xb3f   :  { %v2061_v13 = vmul.f32 %v823_v12, %v794_v55 }
 0xb40   :  { %848 = vrot.lane.b32.xlu1 %v2059_v9, %s1803_s18 }
 0xb41   :  { %846 = vrot.lane.b32.xlu0 %v2061_v13, %s1803_s18 }
 0xb4e   :  { %v78_v14 = vpop.permute.xlu1 %77 }
 0xb4f   :  { %v75_v16 = vpop.permute.xlu0 %74  ;;  %vm94_vm13 = vcmp.eq.s32.totalorder %v1921_v35, %v78_v14 }
 0xb50   :  { %vm93_vm12 = vcmp.eq.s32.totalorder %v1921_v35, %v75_v16 }
 0xb51   :  { %1493 = vmatprep.mubr.msk.f32.mxu1 %vm93_vm12, %v1800_v37 }
 0xb52   :  { %1494 = vmatmul.mubr.msk.f32.gmra.mrb[8].mxu1 %vm94_vm13, %v1800_v37 }
 0xbb2   :  { %v849_v18 = vpop.permute.xlu1 %848 }
 0xbb3   :  { %v847_v17 = vpop.permute.xlu0 %846 }
 0xbb4   :  { %1551 = vmatprep.mubr.msk.f32.mxu0 %vm278_vm7, %v847_v17 }
 0xbb5   :  { %1552 = vmatmul.mubr.msk.f32.vlgmr.msra.gmra.mrb[8].mxu0 %vm278_vm7, %v849_v18  ;;  %v272_v18 = vld [vmem:[%s2198_s1 + $0x8] sm:$0xff] }
 0xbb6   :  { %1658 = vmatpush3.bf16.msra.mxu0 %v1877_v15  ;;  %vm402_vm0 = vcmp.eq.s32.totalorder %v272_v18, 1  ;;  %vm545_vm2 = vcmp.eq.s32.totalorder %v272_v18, 2  ;;  %vm688_vm4 = vcmp.eq.s32.totalorder %v272_v18, 3  ;;  %vm831_vm6 = vcmp.eq.s32.totalorder %v272_v18, 4 }
 0xbb7   :  { %1660 = vmatprep.subr.bf16.mxu0 %v1885_v20  ;;  %vm974_vm9 = vcmp.eq.s32.totalorder %v272_v18, 5  ;;  %vm1117_vm11 = vcmp.eq.s32.totalorder %v272_v18, 6 }
 0xbba   :  { %1662 = vmatpush3.bf16.msra.mxu0 %v1885_v20 }
 0xc25   :  { %v1495_v19 = vpop.f32.mrb[8].mxu1 }
 0xc26   :  { %v243_v21 = vpop.f32.mrb[9].mxu1 }
 0xc88   :  { %v1553_v22 = vpop.f32.mrb[8].mxu0 }
 0xc89   :  { %v930_v23 = vadd.f32 %v1553_v22, %v1495_v19  ;;  %v920_v24 = vpop.f32.mrb[9].mxu0 }
 0xc8a   :  { %v929_v25 = vadd.f32 %v920_v24, %v243_v21 }
 0xc8b   :  { %v932_v26 = vmul.f32 %v930_v23, %v1929_v43  ;;  %v404_v23 = vsel %vm402_vm0, 1, %v1798_v0 }
 0xc8c   :  { %v931_v27 = vmul.f32 %v929_v25, %v1929_v43  ;;  %v547_v25 = vsel %vm545_vm2, 1, %v1798_v0 }
 0xc8d   :  { %1731 = vtanh.f32 %v932_v26 }
 0xc8e   :  { %1733 = vtanh.f32 %v931_v27  ;;  %v690_v27 = vsel %vm688_vm4, 1, %v1798_v0 }
 0xc97   :  { %v1732_v28 = vpop.eup %1731 }
 0xc98   :  { %v1734_v30 = vpop.eup %1733  ;;  %v936_v15 = vmul.f32 %v1732_v28, %v1929_v43 }
 0xc99   :  { %v935_v32 = vmul.f32 %v1734_v30, %v1929_v43  ;;  %v833_v30 = vsel %vm831_vm6, 1, %v1798_v0 }
 0xc9a   :  { %v938_v20 = vadd.f32 %v936_v15, %v1933_v51 }
 0xc9b   :  { %v937_v33 = vadd.f32 %v935_v32, %v1933_v51  ;;  %v976_v32 = vsel %vm974_vm9, 1, %v1798_v0 }
 0xc9c   :  { %945 = vrot.lane.b32.xlu1 %v938_v20, %s1802_s3  ;;  %v940_v40 = vmul.f32 %v938_v20, %v817_v63 }
 0xc9d   :  { %943 = vrot.lane.b32.xlu0 %v937_v33, %s1802_s3  ;;  %v939_v42 = vmul.f32 %v937_v33, %v816_v2 }
 0xd0e   :  { %v946_v34 = vpop.permute.xlu1 %945 }
 0xd0f   :  { %v950_v36 = vmul.f32 %v946_v34, %v938_v20  ;;  %v944_v38 = vpop.permute.xlu0 %943 }
 0xd10   :  { %v949_v39 = vmul.f32 %v944_v38, %v937_v33 }
 0xd11   :  { %955 = vrot.lane.b32.xlu1 %v950_v36, %s1803_s18 }
 0xd12   :  { %953 = vrot.lane.b32.xlu0 %v949_v39, %s1803_s18 }
 0xd83   :  { %v956_v41 = vpop.permute.xlu1 %955 }
 0xd84   :  { %v2086_v44 = vadd.f32 %v956_v41, %v940_v40  ;;  %v954_v45 = vpop.permute.xlu0 %953 }
 0xd85   :  { %v2088_v46 = vadd.f32 %v954_v45, %v939_v42  ;;  %v266_v45 = vld [vmem:[#allocation2 + $0x20] sm:$0xff] }
 0xd86   :  { %1735 = vtanh.f32 %v2086_v44 }
 0xd87   :  { %1737 = vtanh.f32 %v2088_v46 }
 0xd90   :  { %v1736_v47 = vpop.eup %1735 }
 0xd91   :  { %v1738_v48 = vpop.eup %1737  ;;  %967 = vrot.lane.b32.xlu1 %v1736_v47, %s1802_s3  ;;  %v267_v47 = vld [vmem:[#allocation2 + $0x28] sm:$0xff] }
 0xd92   :  { %965 = vrot.lane.b32.xlu0 %v1738_v48, %s1802_s3  ;;  %v268_v48 = vld [vmem:[#allocation2 + $0x30] sm:$0xff] }
 0xd95   :  { %83 = vperm.xlu1 %1698, %v48_v49   ;;  %v1663_v49 = vpack.c.bf16 %v267_v47, %v266_v45 }
 0xd96   :  { %80 = vperm.xlu0 %1697, %v47_v52   ;;  %v269_v52 = vld [vmem:[#allocation2 + $0x38] sm:$0xff] }
 0xd97   :  { %1664 = vmatprep.subr.bf16.mxu0 %v1663_v49 }
 0xe03   :  { %v968_v54 = vpop.permute.xlu1 %967 }
 0xe04   :  { %v2100_v55 = vmul.f32 %v968_v54, %v938_v20  ;;  %v966_v56 = vpop.permute.xlu0 %965 }
 0xe05   :  { %v2102_v57 = vmul.f32 %v966_v56, %v937_v33  ;;  %v1119_v33 = vsel %vm1117_vm11, 1, %v1798_v0 }
 0xe06   :  { %991 = vrot.lane.b32.xlu1 %v2100_v55, %s1803_s18 }
 0xe07   :  { %989 = vrot.lane.b32.xlu0 %v2102_v57, %s1803_s18 }
 0xe14   :  { %v84_v58 = vpop.permute.xlu1 %83 }
 0xe15   :  { %v81_v59 = vpop.permute.xlu0 %80  ;;  %vm96_vm15 = vcmp.eq.s32.totalorder %v1921_v35, %v84_v58 }
 0xe16   :  { %vm95_vm14 = vcmp.eq.s32.totalorder %v1921_v35, %v81_v59 }
 0xe17   :  { %1496 = vmatprep.mubr.msk.f32.mxu1 %vm95_vm14, %v1800_v37 }
 0xe18   :  { %1497 = vmatmul.mubr.msk.f32.gmra.mrb[10].mxu1 %vm96_vm15, %v1800_v37 }
 0xe78   :  { %v992_v61 = vpop.permute.xlu1 %991 }
 0xe79   :  { %v990_v60 = vpop.permute.xlu0 %989 }
 0xe7a   :  { %1562 = vmatprep.mubr.msk.f32.mxu0 %vm278_vm7, %v990_v60 }
 0xe7b   :  { %1563 = vmatmul.mubr.msk.f32.vlgmr.msra.gmra.mrb[10].mxu0 %vm278_vm7, %v992_v61 }
 0xe7c   :  { %1666 = vmatpush3.bf16.msra.mxu0 %v1663_v49 }
 0xeeb   :  { %v1498_v62 = vpop.f32.mrb[10].mxu1 }
 0xeec   :  { %v253_v63 = vpop.f32.mrb[11].mxu1 }
 0xf4e   :  { %v1564_v1 = vpop.f32.mrb[10].mxu0 }
 0xf4f   :  { %v1073_v2 = vadd.f32 %v1564_v1, %v1498_v62  ;;  %v1063_v3 = vpop.f32.mrb[11].mxu0 }
 0xf50   :  { %v1072_v4 = vadd.f32 %v1063_v3, %v253_v63 }
 0xf51   :  { %v1075_v5 = vmul.f32 %v1073_v2, %v1929_v43 }
 0xf52   :  { %v1074_v6 = vmul.f32 %v1072_v4, %v1929_v43 }
 0xf53   :  { %1739 = vtanh.f32 %v1075_v5 }
 0xf54   :  { %1741 = vtanh.f32 %v1074_v6 }
 0xf5d   :  { %v1740_v7 = vpop.eup %1739 }
 0xf5e   :  { %v1742_v37 = vpop.eup %1741  ;;  %v1079_v12 = vmul.f32 %v1740_v7, %v1929_v43 }
 0xf5f   :  { %v1078_v14 = vmul.f32 %v1742_v37, %v1929_v43  ;;  %v271_v43 = vld [vmem:[%s2198_s1] sm:$0xff] }
 0xf60   :  { %v2119_v16 = vadd.f32 %v1079_v12, %v1933_v51  ;;  %vm401_vm1 = vcmp.eq.s32.totalorder %v271_v43, 1  ;;  %vm544_vm3 = vcmp.eq.s32.totalorder %v271_v43, 2  ;;  %vm687_vm5 = vcmp.eq.s32.totalorder %v271_v43, 3 }
 0xf61   :  { %v2122_v17 = vadd.f32 %v1078_v14, %v1933_v51  ;;  %v403_v24 = vsel %vm401_vm1, 1, %v1798_v0  ;;  %v546_v26 = vsel %vm544_vm3, 1, %v1798_v0  ;;  %v689_v28 = vsel %vm687_vm5, 1, %v1798_v0 }
 0xf62   :  { %1088 = vrot.lane.b32.xlu1 %v2119_v16, %s1802_s3  ;;  %vm830_vm8 = vcmp.eq.s32.totalorder %v271_v43, 4  ;;  %vm973_vm10 = vcmp.eq.s32.totalorder %v271_v43, 5  ;;  %vm1116_vm12 = vcmp.eq.s32.totalorder %v271_v43, 6  ;;  %v1083_v36 = vmul.f32 %v2119_v16, %v2086_v44 }
 0xf63   :  { %1086 = vrot.lane.b32.xlu0 %v2122_v17, %s1802_s3  ;;  %v832_v15 = vsel %vm830_vm8, 1, %v1798_v0  ;;  %v975_v20 = vsel %vm973_vm10, 1, %v1798_v0  ;;  %v1118_v34 = vsel %vm1116_vm12, 1, %v1798_v0  ;;  %v1082_v39 = vmul.f32 %v2122_v17, %v2088_v46 }
 0xf64   :  { %v1667_v0 = vpack.c.bf16 %v269_v52, %v268_v48  ;;  %vm1233_vm10 = vcmask 130048  }
 0xf66   :  { %1668 = vmatprep.subr.bf16.mxu0 %v1667_v0 }
 0xf67   :  { %1670 = vmatpush3.bf16.msra.mxu0 %v1667_v0 }
 0xfd4   :  { %v1089_v19 = vpop.permute.xlu1 %1088 }
 0xfd5   :  { %v1093_v21 = vmul.f32 %v1089_v19, %v2119_v16  ;;  %v1087_v22 = vpop.permute.xlu0 %1086 }
 0xfd6   :  { %v1092_v51 = vmul.f32 %v1087_v22, %v2122_v17 }
 0xfd7   :  { %1098 = vrot.lane.b32.xlu1 %v1093_v21, %s1803_s18 }
 0xfd8   :  { %1096 = vrot.lane.b32.xlu0 %v1092_v51, %s1803_s18 }
 0xfdb   :  { %409 = vperm.xlu1 %1698, %v404_v23  }
 0xfdc   :  { %406 = vperm.xlu0 %1697, %v403_v24  }
 0xfdf   :  { %552 = vperm.xlu1 %1698, %v547_v25  }
 0xfe0   :  { %549 = vperm.xlu0 %1697, %v546_v26  }
 0xfe3   :  { %695 = vperm.xlu1 %1698, %v690_v27  }
 0xfe4   :  { %692 = vperm.xlu0 %1697, %v689_v28  }
 0xfe7   :  { %838 = vperm.xlu1 %1698, %v833_v30  }
 0xfe8   :  { %835 = vperm.xlu0 %1697, %v832_v15  }
 0xfeb   :  { %981 = vperm.xlu1 %1698, %v976_v32  }
 0xfec   :  { %978 = vperm.xlu0 %1697, %v975_v20  }
 0xfef   :  { %1124 = vperm.xlu1 %1698, %v1119_v33  }
 0xff0   :  { %1121 = vperm.xlu0 %1697, %v1118_v34  }
0x1049   :  { %v1099_v38 = vpop.permute.xlu1 %1098 }
0x104a   :  { %v1103_v40 = vadd.f32 %v1099_v38, %v1083_v36  ;;  %v1097_v41 = vpop.permute.xlu0 %1096 }
0x104b   :  { %v1102_v42 = vadd.f32 %v1097_v41, %v1082_v39 }
0x104c   :  { %1743 = vtanh.f32 %v1103_v40 }
0x104d   :  { %1745 = vtanh.f32 %v1102_v42 }
0x1056   :  { %v1744_v54 = vpop.eup %1743 }
0x1057   :  { %v1746_v56 = vpop.eup %1745  ;;  %1110 = vrot.lane.b32.xlu1 %v1744_v54, %s1802_s3 }
0x1058   :  { %1108 = vrot.lane.b32.xlu0 %v1746_v56, %s1802_s3 }
0x105a   :  { %v410_v44 = vpop.permute.xlu1 %409 }
0x105b   :  { %v407_v46 = vpop.permute.xlu0 %406  ;;  %vm412_vm13 = vcmp.eq.s32.totalorder %v410_v44, 1 }
0x105c   :  { %vm411_vm14 = vcmp.eq.s32.totalorder %v407_v46, 1  ;;  %v414_v5 = vsel %vm412_vm13, %v1955_v10, 0.0 }
0x105d   :  { %v413_v6 = vsel %vm411_vm14, %v1951_v8, 0.0 }
0x105e   :  { %v553_v58 = vpop.permute.xlu1 %552 }
0x105f   :  { %v550_v59 = vpop.permute.xlu0 %549  ;;  %vm555_vm15 = vcmp.eq.s32.totalorder %v553_v58, 1 }
0x1060   :  { %vm554_vm0 = vcmp.eq.s32.totalorder %v550_v59, 1  ;;  %v557_v7 = vsel %vm555_vm15, %v1987_v50, %v414_v5 }
0x1061   :  { %v556_v37 = vsel %vm554_vm0, %v1989_v53, %v413_v6 }
0x1062   :  { %v696_v60 = vpop.permute.xlu1 %695 }
0x1063   :  { %v693_v61 = vpop.permute.xlu0 %692  ;;  %vm698_vm1 = vcmp.eq.s32.totalorder %v696_v60, 1 }
0x1064   :  { %vm697_vm2 = vcmp.eq.s32.totalorder %v693_v61, 1  ;;  %v700_v12 = vsel %vm698_vm1, %v2023_v29, %v557_v7 }
0x1065   :  { %v699_v18 = vsel %vm697_vm2, %v2025_v31, %v556_v37  ;;  %v1220_v31 = vld [vmem:[%s2199_s2 + $0x8] sm:$0xff] }
0x1066   :  { %v839_v62 = vpop.permute.xlu1 %838 }
0x1067   :  { %v836_v63 = vpop.permute.xlu0 %835  ;;  %vm841_vm3 = vcmp.eq.s32.totalorder %v839_v62, 1 }
0x1068   :  { %vm840_vm4 = vcmp.eq.s32.totalorder %v836_v63, 1  ;;  %v843_v43 = vsel %vm841_vm3, %v2059_v9, %v700_v12  ;;  %v1219_v9 = vld [vmem:[%s2199_s2] sm:$0xff]  ;;  %s1804_s2 = smov [#allocation5]  }
0x1069   :  { %v842_v21 = vsel %vm840_vm4, %v2061_v13, %v699_v18 }
0x106a   :  { %v982_v1 = vpop.permute.xlu1 %981 }
0x106b   :  { %v979_v2 = vpop.permute.xlu0 %978  ;;  %vm984_vm5 = vcmp.eq.s32.totalorder %v982_v1, 1 }
0x106c   :  { %vm983_vm6 = vcmp.eq.s32.totalorder %v979_v2, 1  ;;  %v986_v8 = vsel %vm984_vm5, %v2100_v55, %v843_v43 }
0x106d   :  { %v985_v53 = vsel %vm983_vm6, %v2102_v57, %v842_v21 }
0x106e   :  { %v1125_v3 = vpop.permute.xlu1 %1124 }
0x106f   :  { %v1122_v4 = vpop.permute.xlu0 %1121  ;;  %vm1127_vm8 = vcmp.eq.s32.totalorder %v1125_v3, 1 }
0x1070   :  { %vm1126_vm9 = vcmp.eq.s32.totalorder %v1122_v4, 1 }
0x10c9   :  { %v1111_v14 = vpop.permute.xlu1 %1110 }
0x10ca   :  { %v1115_v10 = vmul.f32 %v1111_v14, %v2119_v16  ;;  %v1109_v19 = vpop.permute.xlu0 %1108 }
0x10cb   :  { %v1114_v50 = vmul.f32 %v1109_v19, %v2122_v17  ;;  %v1368_v17 = vld [vmem:[#allocation2 + $0x40] ss:$0 sm:$0xff] }
0x10cc   :  { %v1129_v29 = vsel %vm1127_vm8, %v1115_v10, %v986_v8 }
0x10cd   :  { %1138 = vrot.lane.b32.xlu1 %v1129_v29, %s1803_s18  ;;  %v1128_v22 = vsel %vm1126_vm9, %v1114_v50, %v985_v53 }
0x10ce   :  { %1136 = vrot.lane.b32.xlu0 %v1128_v22, %s1803_s18  ;;  %s1322_s18 = sshll.u32 %s1804_s2, 4  ;;  %s1323_s18 = int_to_ptr.vmem [resolvable:$true] %s1322_s18 }
0x10cf   :  { %s1769_s21 = scalar_lea.vmem %s1323_s18, 256  ;;  %p1774_p9 = scmp.lt.s32.totalorder %s1323_s18, %s1323_s18 }
0x10d0   :  { %p1770_p8 = scmp.ne.s32.totalorder %s1323_s18, %s1769_s21  ;;  %p1775_p10 = scmp.lt.s32.totalorder %s1769_s21, %s1769_s21 }
0x10d1   :  { %1225 = vperm.xlu1 %1698, %v1220_v31  }
0x10d2   :  { %1222 = vperm.xlu0 %1697, %v1219_v9   ;;  %p1776_p11 = por %p1775_p10, %p1774_p9 }
0x10d4   :  { %p1777_p12 = pnand %p1776_p11, %p1770_p8 }
0x113f   :  { %v1139_v55 = vpop.permute.xlu1 %1138 }
0x1140   :  { %v1137_v13 = vpop.permute.xlu0 %1136 }
0x1141   :  { %1573 = vmatprep.mubr.msk.f32.mxu0 %vm278_vm7, %v1137_v13 }
0x1142   :  { %1574 = vmatmul.mubr.msk.f32.vlgmr.msra.gmra.mrb[12].mxu0 %vm278_vm7, %v1139_v55 }
0x1150   :  { %v1226_v26 = vpop.permute.xlu1 %1225 }
0x1151   :  { %v1223_v57 = vpop.permute.xlu0 %1222  ;;  %vm1228_vm12 = vcmp.eq.s32.totalorder %v1921_v35, %v1226_v26 }
0x1152   :  { %vm1227_vm11 = vcmp.eq.s32.totalorder %v1921_v35, %v1223_v57  ;;  %v1372_v28 = vsel %vm1228_vm12, 1.0, %v1799_v11 }
0x1153   :  { %v1371_v16 = vsel %vm1227_vm11, 1.0, %v1799_v11 }
0x1154   :  { %1580 = vmatprep.mubr.msk.f32.mxu1 %vm1233_vm10, %v1371_v16 }
0x1215   :  { %v1575_v51 = vpop.f32.mrb[12].mxu0 }
0x1216   :  { %v1216_v23 = vadd.f32 %v1575_v51, %v1368_v17  ;;  %v1210_v24 = vpop.f32.mrb[13].mxu0 }
0x1217   :  { %v1211_v25 = vadd.f32 %v1368_v17, %v1210_v24 }
0x1219   :  { %v1671_v27 = vpack.c.bf16 %v1216_v23, %v1211_v25 }
0x121b   :  { %1672 = vmatprep.subr.bf16.mxu1 %v1671_v27 }
0x121c   :  { %1674 = vmatpush3.bf16.msra.mxu1 %v1671_v27 }
0x121f   :  { %1581 = vmatmul.mubr.msk.f32.vlgmr.msra.gmra.mrb[12].mxu1 %vm1233_vm10, %v1372_v28 }
0x12f2   :  { %v1582_v30 = vpop.f32.mrb[12].mxu1 }
0x12f3   :  { %1316 = vst [vmem:[#allocation5 + $0x8] sm:$0xff] %v1582_v30  ;;  %v1306_v15 = vpop.f32.mrb[13].mxu1 }
0x12f4   :  { %1315 = vst [vmem:[#allocation5] sm:$0xff] %v1306_v15 }
0x12f5   :  { %1780 = shalt.err (!%p1777_p12)
}
0x12f6   :  { %s1781_s24 = scalar_lea.hbm %s2202_s5, 256 }
0x12f7   :  { %p1782_p13 = scmp.ne.s32.totalorder %s2202_s5, %s1781_s24  ;;  %p1785_p0 = scmp.lt.u32.totalorder %s1781_s24, %s2202_s5 }
0x12f9   :  { %p1787_p1 = pnand %p1785_p0, %p1782_p13 }
0x12fb   :  { %1790 = shalt.err (!%p1787_p1)
}
0x12fc   :  { %1328 = dma.vmem_to_hbm [thread:$0]  %s1323_s18, 256, %s2202_s5, [#allocation4], %s1796_s28, %s1796_s28, %s1797_s29  }
0x12fd   :  { %1793 = dma.done.wait [#allocation4], 256  }
0x12fe   :  { %1794 = vsyncadd [#allocation4], 4294967040 }
0x12ff   :  { %1332 = vsyncpa [#allocation3], 1 }
0x1300   :  { %1333 = vsyncpa [#allocation4], 1 }

</bundles_post_ra>
